<compile_context>
chip_gen: v7x
topology: tpu7x:2x2x1
jax: 0.10.0
libtpu: 0.0.40
codegen_flags: <defaults>
</compile_context>

<pallas_src>
import jax
import jax.numpy as jnp
from jax.experimental import pallas as pl
from jax.experimental.pallas import tpu as pltpu

# ---- model dims (tile-friendly: multiples of (8, 128)) ----
BATCH = 256
IN_F = 256
HID_F = 256
OUT_F = 128


def mlp_kernel(x_ref, w1_ref, b1_ref, w2_ref, b2_ref, o_ref):
    # Linear 1 + ReLU + Linear 2, all fused in VMEM.
    x = x_ref[...]                                                    # (B, IN)   bf16
    h = jnp.dot(x, w1_ref[...], preferred_element_type=jnp.float32)   # (B, HID)  MXU, f32 acc
    h = jnp.maximum(h + b1_ref[...], 0.0)                             # bias + ReLU in f32 (VPU)
    y = jnp.dot(h.astype(w2_ref.dtype), w2_ref[...],
                preferred_element_type=jnp.float32)                   # (B, OUT)  MXU, f32 acc
    y = y + b2_ref[...]
    o_ref[...] = y.astype(o_ref.dtype)                                # bf16 writeback


def my_sequential_forward(x, w1, b1, w2, b2):
    B, in_f = x.shape
    hid_f = w1.shape[1]
    out_f = w2.shape[1]

    # Advisory cost hint for XLA's scheduler around the custom call.
    flops = 2 * B * (in_f * hid_f + hid_f * out_f)
    bytes_accessed = (x.size * x.dtype.itemsize
                      + w1.size * w1.dtype.itemsize + b1.size * b1.dtype.itemsize
                      + w2.size * w2.dtype.itemsize + b2.size * b2.dtype.itemsize
                      + B * out_f * jnp.dtype(jnp.bfloat16).itemsize)

    whole = lambda i: (0, 0)   # single grid step: every block index is constant
    return pl.pallas_call(
        mlp_kernel,
        out_shape=jax.ShapeDtypeStruct((B, out_f), jnp.bfloat16),
        grid=(1,),                                                    # single step: no pipeline overhead
        in_specs=[
            pl.BlockSpec((B, in_f), whole),                           # x: full batch tile (fills MXU rows)
            pl.BlockSpec((in_f, hid_f), whole),                       # W1 resident in VMEM
            pl.BlockSpec((1, hid_f), whole),                          # b1
            pl.BlockSpec((hid_f, out_f), whole),                      # W2
            pl.BlockSpec((1, out_f), whole),                          # b2
        ],
        out_specs=pl.BlockSpec((B, out_f), whole),
        compiler_params=pltpu.CompilerParams(
            dimension_semantics=("arbitrary",)),                      # 1 step: nothing to shard
        cost_estimate=pl.CostEstimate(
            flops=flops, transcendentals=0, bytes_accessed=bytes_accessed),
    )(x, w1, b1, w2, b2)


def init_params(key):
    """Deterministic init mimicking torch.nn.Linear (uniform(-1/sqrt(fan_in), +)).

    Weights are cast to bf16 (halves HBM weight traffic, 2x MXU rate on v6e/v7x);
    biases stay f32 since they are added to the f32 accumulator.
    """
    k1, k2, k3, k4 = jax.random.split(key, 4)
    bound1 = 1.0 / jnp.sqrt(IN_F)
    bound2 = 1.0 / jnp.sqrt(HID_F)
    w1 = jax.random.uniform(k1, (IN_F, HID_F), jnp.float32, -bound1, bound1).astype(jnp.bfloat16)
    b1 = jax.random.uniform(k2, (1, HID_F), jnp.float32, -bound1, bound1)
    w2 = jax.random.uniform(k3, (HID_F, OUT_F), jnp.float32, -bound2, bound2).astype(jnp.bfloat16)
    b2 = jax.random.uniform(k4, (1, OUT_F), jnp.float32, -bound2, bound2)
    return w1, b1, w2, b2


if __name__ == "__main__":
    key = jax.random.PRNGKey(0)
    kx, kp = jax.random.split(key)
    x = jax.random.normal(kx, (BATCH, IN_F), jnp.float32).astype(jnp.bfloat16)
    w1, b1, w2, b2 = init_params(kp)

    out = my_sequential_forward(x, w1, b1, w2, b2)
    out = jax.block_until_ready(out)

    # Pure-JAX reference of MySequential(Linear, ReLU, Linear).forward with the same
    # bf16-quantized inputs/intermediates and f32 accumulation (matches kernel numerics).
    xf, w1f, w2f = x.astype(jnp.float32), w1.astype(jnp.float32), w2.astype(jnp.float32)
    h = jnp.maximum(xf @ w1f + b1, 0.0).astype(jnp.bfloat16).astype(jnp.float32)
    ref = h @ w2f + b2

    assert out.shape == (BATCH, OUT_F)
    assert out.dtype == jnp.bfloat16
    # Output is bf16 (~3 significant decimal digits) -> slightly looser rtol.
    assert jnp.allclose(out.astype(jnp.float32), ref, atol=1e-2, rtol=2e-2)

    print("KERNEL_OK")
</pallas_src>

<mosaic_0001>
module attributes {stable_mosaic.version = 11 : i64} {
  func.func @mlp_kernel(%arg0: i32, %arg1: memref<256x256xbf16, #tpu.memory_space<vmem>>, %arg2: memref<256x256xbf16, #tpu.memory_space<vmem>>, %arg3: memref<1x256xf32, #tpu.memory_space<vmem>>, %arg4: memref<256x128xbf16, #tpu.memory_space<vmem>>, %arg5: memref<1x128xf32, #tpu.memory_space<vmem>>, %arg6: memref<256x128xbf16, #tpu.memory_space<vmem>>) attributes {dimension_semantics = [#tpu.dimension_semantics<arbitrary>], iteration_bounds = array<i64: 1>, scalar_prefetch = 0 : i64, scratch_operands = 0 : i64, tpu.core_type = #tpu.core_type<tc>, window_params = [{pipeline_mode = #tpu.pipeline_mode<synchronous>, transform_indices = @transform_0, window_bounds = array<i64: 256, 256>}, {pipeline_mode = #tpu.pipeline_mode<synchronous>, transform_indices = @transform_1, window_bounds = array<i64: 256, 256>}, {pipeline_mode = #tpu.pipeline_mode<synchronous>, transform_indices = @transform_2, window_bounds = array<i64: 1, 256>}, {pipeline_mode = #tpu.pipeline_mode<synchronous>, transform_indices = @transform_3, window_bounds = array<i64: 256, 128>}, {pipeline_mode = #tpu.pipeline_mode<synchronous>, transform_indices = @transform_4, window_bounds = array<i64: 1, 128>}, {pipeline_mode = #tpu.pipeline_mode<synchronous>, transform_indices = @transform_5, window_bounds = array<i64: 256, 128>}]} {
    %c0 = arith.constant 0 : index
    %c0_0 = arith.constant 0 : index
    %0 = vector.load %arg1[%c0, %c0_0] : memref<256x256xbf16, #tpu.memory_space<vmem>>, vector<256x256xbf16>
    %c0_1 = arith.constant 0 : index
    %c0_2 = arith.constant 0 : index
    %1 = vector.load %arg2[%c0_1, %c0_2] : memref<256x256xbf16, #tpu.memory_space<vmem>>, vector<256x256xbf16>
    %cst = arith.constant dense<0.000000e+00> : vector<256x256xf32>
    %2 = tpu.matmul %0, %1, %cst {dimension_numbers = #tpu.dot_dimension_numbers<[1], [0], [0], [1], [0, 0, 1, 1], [], []>} : vector<256x256xbf16>, vector<256x256xbf16>, vector<256x256xf32> -> vector<256x256xf32>
    %c0_3 = arith.constant 0 : index
    %c0_4 = arith.constant 0 : index
    %3 = vector.load %arg3[%c0_3, %c0_4] : memref<1x256xf32, #tpu.memory_space<vmem>>, vector<1x256xf32>
    %4 = vector.broadcast %3 : vector<1x256xf32> to vector<256x256xf32>
    %5 = arith.addf %2, %4 : vector<256x256xf32>
    %cst_5 = arith.constant 0.000000e+00 : f32
    %6 = vector.broadcast %cst_5 : f32 to vector<256x256xf32>
    %7 = arith.maximumf %5, %6 : vector<256x256xf32>
    %8 = arith.truncf %7 : vector<256x256xf32> to vector<256x256xbf16>
    %c0_6 = arith.constant 0 : index
    %c0_7 = arith.constant 0 : index
    %9 = vector.load %arg4[%c0_6, %c0_7] : memref<256x128xbf16, #tpu.memory_space<vmem>>, vector<256x128xbf16>
    %cst_8 = arith.constant dense<0.000000e+00> : vector<256x128xf32>
    %10 = tpu.matmul %8, %9, %cst_8 {dimension_numbers = #tpu.dot_dimension_numbers<[1], [0], [0], [1], [0, 0, 1, 1], [], []>} : vector<256x256xbf16>, vector<256x128xbf16>, vector<256x128xf32> -> vector<256x128xf32>
    %c0_9 = arith.constant 0 : index
    %c0_10 = arith.constant 0 : index
    %11 = vector.load %arg5[%c0_9, %c0_10] : memref<1x128xf32, #tpu.memory_space<vmem>>, vector<1x128xf32>
    %12 = vector.broadcast %11 : vector<1x128xf32> to vector<256x128xf32>
    %13 = arith.addf %10, %12 : vector<256x128xf32>
    %14 = arith.truncf %13 : vector<256x128xf32> to vector<256x128xbf16>
    %c0_11 = arith.constant 0 : index
    %c0_12 = arith.constant 0 : index
    %15 = vector.load %arg6[%c0_11, %c0_12] : memref<256x128xbf16, #tpu.memory_space<vmem>>, vector<256x128xbf16>
    tpu.vector_store %arg6[%c0_11, %c0_12], %14 {strides = array<i32>} : memref<256x128xbf16, #tpu.memory_space<vmem>>, vector<256x128xbf16>,
    return
  }
  func.func @transform_0(%arg0: i32) -> (i32, i32) {
    %c0_i32 = arith.constant 0 : i32
    %c0_i32_0 = arith.constant 0 : i32
    %c0_i32_1 = arith.constant 0 : i32
    return %c0_i32, %c0_i32_0 : i32, i32
  }
  func.func @transform_1(%arg0: i32) -> (i32, i32) {
    %c0_i32 = arith.constant 0 : i32
    %c0_i32_0 = arith.constant 0 : i32
    %c0_i32_1 = arith.constant 0 : i32
    return %c0_i32, %c0_i32_0 : i32, i32
  }
  func.func @transform_2(%arg0: i32) -> (i32, i32) {
    %c0_i32 = arith.constant 0 : i32
    %c0_i32_0 = arith.constant 0 : i32
    %c0_i32_1 = arith.constant 0 : i32
    return %c0_i32, %c0_i32_0 : i32, i32
  }
  func.func @transform_3(%arg0: i32) -> (i32, i32) {
    %c0_i32 = arith.constant 0 : i32
    %c0_i32_0 = arith.constant 0 : i32
    %c0_i32_1 = arith.constant 0 : i32
    return %c0_i32, %c0_i32_0 : i32, i32
  }
  func.func @transform_4(%arg0: i32) -> (i32, i32) {
    %c0_i32 = arith.constant 0 : i32
    %c0_i32_0 = arith.constant 0 : i32
    %c0_i32_1 = arith.constant 0 : i32
    return %c0_i32, %c0_i32_0 : i32, i32
  }
  func.func @transform_5(%arg0: i32) -> (i32, i32) {
    %c0_i32 = arith.constant 0 : i32
    %c0_i32_0 = arith.constant 0 : i32
    %c0_i32_1 = arith.constant 0 : i32
    return %c0_i32, %c0_i32_0 : i32, i32
  }
}

</mosaic_0001>

<bundles_post_ra>
// kernel: tpu_custom_call.1
= control target key start
LH: loop header
LB: loop body
LE: loop exit
PB: predicated region body
PF: predicated region fallthrough
CT: control target
= control target key end

     0   :  { %10 = vsyncpa [#allocation3], 0  ;;  %s1995_s0 = inlined_call_operand.hbm [shape: bf16[256,256], index: 0, kind: input, shape index: {}]   ;;  %s1996_s1 = inlined_call_operand.hbm [shape: bf16[256,256], index: 1, kind: input, shape index: {}]   ;;  %s1997_s2 = inlined_call_operand.vmem [shape: f32[1,256], index: 2, kind: input, shape index: {}]   ;;  %s1998_s3 = inlined_call_operand.hbm [shape: bf16[256,128], index: 3, kind: input, shape index: {}]   ;;  %s1999_s4 = inlined_call_operand.vmem [shape: f32[1,128], index: 4, kind: input, shape index: {}]   ;;  %s2000_s5 = inlined_call_operand.hbm [shape: bf16[256,128], index: 5, kind: output, shape index: {}]  }
   0x1   :  { %11 = vsyncpa [#allocation6], 0 }
   0x2   :  { %12 = vsyncpa [#allocation4], 0  ;;  %s1788_s18 = smov [#allocation5]   ;;  %s1789_s20 = smov [#allocation2]  }
   0x3   :  { %s30_s19 = sshll.u32 %s1788_s18, 4  ;;  %s18_s21 = sshll.u32 %s1789_s20, 4  ;;  %s31_s19 = int_to_ptr.vmem [resolvable:$true] %s30_s19  ;;  %s1826_s21 = int_to_ptr.vmem [resolvable:$true] %s18_s21 }
   0x4   :  { %s1694_s24 = scalar_lea.hbm %s1996_s1, 4096 }
   0x5   :  { %p1695_p0 = scmp.ne.s32.totalorder %s1996_s1, %s1694_s24  ;;  %p1698_p1 = scmp.lt.u32.totalorder %s1694_s24, %s1996_s1 }
   0x7   :  { %p1700_p2 = pnand %p1698_p1, %p1695_p0 }
   0x9   :  { %1703 = shalt.err (!%p1700_p2)
}
   0xa   :  { %s1704_s29 = scalar_lea.vmem %s31_s19, 4096  ;;  %p1709_p4 = scmp.lt.s32.totalorder %s31_s19, %s31_s19 }
   0xb   :  { %p1705_p3 = scmp.ne.s32.totalorder %s31_s19, %s1704_s29  ;;  %p1710_p5 = scmp.lt.s32.totalorder %s1704_s29, %s1704_s29 }
   0xd   :  { %p1711_p6 = por %p1710_p5, %p1709_p4 }
   0xf   :  { %p1712_p7 = pnand %p1711_p6, %p1705_p3 }
  0x11   :  { %1715 = shalt.err (!%p1712_p7)
}
  0x12   :  { %s1790_s30 = smov 128   ;;  %s1791_s6 = smov 8  }
  0x13   :  { %36 = dma.hbm_to_vmem [thread:$0]  %s1996_s1, 4096, %s31_s19, [#allocation6], %s1790_s30, %s1790_s30, %s1791_s6  }
  0x14   :  { %s1716_s11 = scalar_lea.hbm %s1995_s0, 4096 }
  0x15   :  { %p1717_p8 = scmp.ne.s32.totalorder %s1995_s0, %s1716_s11  ;;  %p1720_p9 = scmp.lt.u32.totalorder %s1716_s11, %s1995_s0 }
  0x17   :  { %p1722_p10 = pnand %p1720_p9, %p1717_p8 }
  0x19   :  { %1725 = shalt.err (!%p1722_p10)
}
  0x1a   :  { %s1726_s16 = scalar_lea.vmem %s1826_s21, 4096  ;;  %p1731_p12 = scmp.lt.s32.totalorder %s1826_s21, %s1826_s21 }
  0x1b   :  { %p1727_p11 = scmp.ne.s32.totalorder %s1826_s21, %s1726_s16  ;;  %p1732_p13 = scmp.lt.s32.totalorder %s1726_s16, %s1726_s16 }
  0x1d   :  { %p1733_p0 = por %p1732_p13, %p1731_p12 }
  0x1f   :  { %p1734_p1 = pnand %p1733_p0, %p1727_p11 }
  0x21   :  { %1737 = shalt.err (!%p1734_p1)
}
  0x22   :  { %24 = dma.hbm_to_vmem [thread:$0]  %s1995_s0, 4096, %s1826_s21, [#allocation3], %s1790_s30, %s1790_s30, %s1791_s6  }
  0x23   :  { %s1792_s18 = smov [#allocation7]   ;;  %s1738_s23 = scalar_lea.hbm %s1998_s3, 2048 }
  0x24   :  { %s44_s19 = sshll.u32 %s1792_s18, 4  ;;  %p1739_p2 = scmp.ne.s32.totalorder %s1998_s3, %s1738_s23  ;;  %s45_s19 = int_to_ptr.vmem [resolvable:$true] %s44_s19 }
  0x25   :  { %p1742_p3 = scmp.lt.u32.totalorder %s1738_s23, %s1998_s3 }
  0x27   :  { %p1744_p4 = pnand %p1742_p3, %p1739_p2 }
  0x29   :  { %1747 = shalt.err (!%p1744_p4)
}
  0x2a   :  { %s1748_s28 = scalar_lea.vmem %s45_s19, 2048  ;;  %p1753_p6 = scmp.lt.s32.totalorder %s45_s19, %s45_s19 }
  0x2b   :  { %p1749_p5 = scmp.ne.s32.totalorder %s45_s19, %s1748_s28  ;;  %p1754_p7 = scmp.lt.s32.totalorder %s1748_s28, %s1748_s28 }
  0x2d   :  { %p1755_p8 = por %p1754_p7, %p1753_p6 }
  0x2f   :  { %p1756_p9 = pnand %p1755_p8, %p1749_p5 }
  0x31   :  { %1759 = shalt.err (!%p1756_p9)
}
  0x32   :  { %s1793_s0 = smov 64   ;;  %s1794_s21 = smov 4  }
  0x33   :  { %50 = dma.hbm_to_vmem [thread:$0]  %s1998_s3, 2048, %s45_s19, [#allocation6], %s1793_s0, %s1793_s0, %s1794_s21  }
  0x34   :  { %1782 = dma.done.wait [#allocation3], 4096  }
  0x35   :  { %1783 = vsyncadd [#allocation3], 4294963200 }
  0x36   :  { %1784 = dma.done.wait [#allocation6], 6144  }
  0x37   :  { %1785 = vsyncadd [#allocation6], 4294961152  ;;  %v1582_v0 = vld [vmem:[#allocation5 + $0x4] ss:$8 sps:$4 sm:$0xff]   ;;  %v1584_v1 = vld [vmem:[#allocation5] ss:$8 sps:$4 sm:$0xff]  }
  0x38   :  { %459 = vmatprep.subr.bf16.mxu0 %v1582_v0  ;;  %v1585_v2 = vld [vmem:[#allocation5 + $0x14] ss:$8 sps:$4 sm:$0xff]   ;;  %v1587_v3 = vld [vmem:[#allocation5 + $0x10] ss:$8 sps:$4 sm:$0xff]   ;;  %v1588_v4 = vld [vmem:[#allocation5 + $0x24] ss:$8 sps:$4 sm:$0xff]  }
  0x39   :  { %460 = vmatpush1.bf16.msra.mxu0 %v1584_v1  ;;  %v1590_v5 = vld [vmem:[#allocation5 + $0x20] ss:$8 sps:$4 sm:$0xff]   ;;  %v1591_v6 = vld [vmem:[#allocation5 + $0x34] ss:$8 sps:$4 sm:$0xff]   ;;  %v1593_v7 = vld [vmem:[#allocation5 + $0x30] ss:$8 sps:$4 sm:$0xff]  }
  0x3a   :  { %461 = vmatprep.subr.bf16.mxu0 %v1585_v2  ;;  %v1594_v8 = vld [vmem:[#allocation5 + $0x44] ss:$8 sps:$4 sm:$0xff]   ;;  %v1596_v9 = vld [vmem:[#allocation5 + $0x40] ss:$8 sps:$4 sm:$0xff]   ;;  %v1597_v10 = vld [vmem:[#allocation5 + $0x54] ss:$8 sps:$4 sm:$0xff]  }
  0x3b   :  { %v1599_v11 = vld [vmem:[#allocation5 + $0x50] ss:$8 sps:$4 sm:$0xff]   ;;  %v1600_v12 = vld [vmem:[#allocation5 + $0x64] ss:$8 sps:$4 sm:$0xff]   ;;  %v1602_v14 = vld [vmem:[#allocation5 + $0x60] ss:$8 sps:$4 sm:$0xff]  }
  0x3c   :  { %v1632_v13 = vld [vmem:[#allocation2 + $0x4] ss:$8 sps:$4 sm:$0xff]   ;;  %v1603_v15 = vld [vmem:[#allocation5 + $0x74] ss:$8 sps:$4 sm:$0xff]   ;;  %v1605_v16 = vld [vmem:[#allocation5 + $0x70] ss:$8 sps:$4 sm:$0xff]  }
  0x3d   :  { %462 = vmatpush1.bf16.msra.mxu0 %v1587_v3  ;;  %491 = vmatprep.mubr.bf16.mxu0 %v1632_v13  ;;  %v1606_v17 = vld [vmem:[#allocation5 + $0x84] ss:$8 sps:$4 sm:$0xff]   ;;  %v1608_v18 = vld [vmem:[#allocation5 + $0x80] ss:$8 sps:$4 sm:$0xff]   ;;  %v1609_v19 = vld [vmem:[#allocation5 + $0x94] ss:$8 sps:$4 sm:$0xff]  }
  0x3e   :  { %463 = vmatprep.subr.bf16.mxu0 %v1588_v4  ;;  %v1611_v20 = vld [vmem:[#allocation5 + $0x90] ss:$8 sps:$4 sm:$0xff]   ;;  %v1612_v21 = vld [vmem:[#allocation5 + $0xa4] ss:$8 sps:$4 sm:$0xff]   ;;  %v1614_v22 = vld [vmem:[#allocation5 + $0xa0] ss:$8 sps:$4 sm:$0xff]  }
  0x3f   :  { %v1615_v23 = vld [vmem:[#allocation5 + $0xb4] ss:$8 sps:$4 sm:$0xff]   ;;  %v1617_v24 = vld [vmem:[#allocation5 + $0xb0] ss:$8 sps:$4 sm:$0xff]   ;;  %v1618_v25 = vld [vmem:[#allocation5 + $0xc4] ss:$8 sps:$4 sm:$0xff]  }
  0x40   :  { %v1620_v26 = vld [vmem:[#allocation5 + $0xc0] ss:$8 sps:$4 sm:$0xff]   ;;  %v1621_v27 = vld [vmem:[#allocation5 + $0xd4] ss:$8 sps:$4 sm:$0xff]   ;;  %v1623_v28 = vld [vmem:[#allocation5 + $0xd0] ss:$8 sps:$4 sm:$0xff]  }
  0x41   :  { %464 = vmatpush1.bf16.msra.mxu0 %v1590_v5  ;;  %v1624_v29 = vld [vmem:[#allocation5 + $0xe4] ss:$8 sps:$4 sm:$0xff]   ;;  %v1626_v30 = vld [vmem:[#allocation5 + $0xe0] ss:$8 sps:$4 sm:$0xff]   ;;  %v1627_v31 = vld [vmem:[#allocation5 + $0xf4] ss:$8 sps:$4 sm:$0xff]  }
  0x42   :  { %465 = vmatprep.subr.bf16.mxu0 %v1591_v6  ;;  %v1678_v32 = vld [vmem:[#allocation7 + $0x40] sm:$0xff]   ;;  %v1680_v34 = vld [vmem:[#allocation7 + $0x48] sm:$0xff]   ;;  %v1629_v35 = vld [vmem:[#allocation5 + $0xf0] ss:$8 sps:$4 sm:$0xff]  }
  0x43   :  { %v1679_v33 = vld [vmem:[#allocation7] sm:$0xff]   ;;  %1462 = vmatprep.subr.bf16.mxu1 %v1678_v32  ;;  %v1681_v36 = vld [vmem:[#allocation7 + $0x8] sm:$0xff]   ;;  %v1682_v38 = vld [vmem:[#allocation7 + $0x50] sm:$0xff]  }
  0x44   :  { %1463 = vmatpush3.bf16.msra.mxu1 %v1679_v33  ;;  %v1630_v37 = vld [vmem:[#allocation2] ss:$8 sps:$4 sm:$0xff]   ;;  %v1633_v39 = vld [vmem:[#allocation2 + $0x14] ss:$8 sps:$4 sm:$0xff]   ;;  %v1635_v43 = vld [vmem:[#allocation2 + $0x10] ss:$8 sps:$4 sm:$0xff]  }
  0x45   :  { %466 = vmatpush1.bf16.msra.mxu0 %v1593_v7  ;;  %1464 = vmatprep.subr.bf16.mxu1 %v1680_v34  ;;  %v1683_v40 = vld [vmem:[#allocation7 + $0x10] sm:$0xff]   ;;  %v1684_v41 = vld [vmem:[#allocation7 + $0x58] sm:$0xff]   ;;  %v1686_v44 = vld [vmem:[#allocation7 + $0x60] sm:$0xff]  }
  0x46   :  { %467 = vmatprep.subr.bf16.mxu0 %v1594_v8  ;;  %v1685_v42 = vld [vmem:[#allocation7 + $0x18] sm:$0xff]   ;;  %v1636_v45 = vld [vmem:[#allocation2 + $0x24] ss:$8 sps:$4 sm:$0xff]   ;;  %v1638_v48 = vld [vmem:[#allocation2 + $0x20] ss:$8 sps:$4 sm:$0xff]  }
  0x47   :  { %v1687_v46 = vld [vmem:[#allocation7 + $0x20] sm:$0xff]   ;;  %v1688_v47 = vld [vmem:[#allocation7 + $0x68] sm:$0xff]   ;;  %v1639_v49 = vld [vmem:[#allocation2 + $0x34] ss:$8 sps:$4 sm:$0xff]  }
  0x48   :  { %1465 = vmatpush3.bf16.msra.mxu1 %v1681_v36  ;;  %v1641_v50 = vld [vmem:[#allocation2 + $0x30] ss:$8 sps:$4 sm:$0xff]   ;;  %v1642_v51 = vld [vmem:[#allocation2 + $0x44] ss:$8 sps:$4 sm:$0xff]   ;;  %v1644_v52 = vld [vmem:[#allocation2 + $0x40] ss:$8 sps:$4 sm:$0xff]  }
  0x49   :  { %468 = vmatpush1.bf16.msra.mxu0 %v1596_v9  ;;  %1466 = vmatprep.subr.bf16.mxu1 %v1682_v38  ;;  %v1645_v53 = vld [vmem:[#allocation2 + $0x54] ss:$8 sps:$4 sm:$0xff]   ;;  %v1647_v54 = vld [vmem:[#allocation2 + $0x50] ss:$8 sps:$4 sm:$0xff]   ;;  %v1648_v55 = vld [vmem:[#allocation2 + $0x64] ss:$8 sps:$4 sm:$0xff]  }
  0x4a   :  { %469 = vmatprep.subr.bf16.mxu0 %v1597_v10  ;;  %v1650_v56 = vld [vmem:[#allocation2 + $0x60] ss:$8 sps:$4 sm:$0xff]   ;;  %v1651_v57 = vld [vmem:[#allocation2 + $0x74] ss:$8 sps:$4 sm:$0xff]   ;;  %v1653_v58 = vld [vmem:[#allocation2 + $0x70] ss:$8 sps:$4 sm:$0xff]  }
  0x4b   :  { %v1654_v59 = vld [vmem:[#allocation2 + $0x84] ss:$8 sps:$4 sm:$0xff]   ;;  %v1656_v60 = vld [vmem:[#allocation2 + $0x80] ss:$8 sps:$4 sm:$0xff]   ;;  %v1657_v61 = vld [vmem:[#allocation2 + $0x94] ss:$8 sps:$4 sm:$0xff]  }
  0x4c   :  { %1467 = vmatpush3.bf16.msra.mxu1 %v1683_v40  ;;  %v1659_v62 = vld [vmem:[#allocation2 + $0x90] ss:$8 sps:$4 sm:$0xff]   ;;  %v1660_v63 = vld [vmem:[#allocation2 + $0xa4] ss:$8 sps:$4 sm:$0xff]   ;;  %v1662_v0 = vld [vmem:[#allocation2 + $0xa0] ss:$8 sps:$4 sm:$0xff]  }
  0x4d   :  { %470 = vmatpush1.bf16.msra.mxu0 %v1599_v11  ;;  %1468 = vmatprep.subr.bf16.mxu1 %v1684_v41  ;;  %v1663_v1 = vld [vmem:[#allocation2 + $0xb4] ss:$8 sps:$4 sm:$0xff]   ;;  %v1689_v2 = vld [vmem:[#allocation7 + $0x28] sm:$0xff]   ;;  %v1665_v3 = vld [vmem:[#allocation2 + $0xb0] ss:$8 sps:$4 sm:$0xff]  }
  0x4e   :  { %471 = vmatprep.subr.bf16.mxu0 %v1600_v12  ;;  %v1690_v4 = vld [vmem:[#allocation7 + $0x70] sm:$0xff]   ;;  %v1666_v5 = vld [vmem:[#allocation2 + $0xc4] ss:$8 sps:$4 sm:$0xff]   ;;  %v1692_v7 = vld [vmem:[#allocation7 + $0x78] sm:$0xff]  }
  0x4f   :  { %v1691_v6 = vld [vmem:[#allocation7 + $0x30] sm:$0xff]   ;;  %v1693_v8 = vld [vmem:[#allocation7 + $0x38] sm:$0xff]   ;;  %v1668_v9 = vld [vmem:[#allocation2 + $0xc0] ss:$8 sps:$4 sm:$0xff]  }
  0x50   :  { %1469 = vmatpush3.bf16.msra.mxu1 %v1685_v42  ;;  %v1669_v10 = vld [vmem:[#allocation2 + $0xd4] ss:$8 sps:$4 sm:$0xff]   ;;  %v1671_v11 = vld [vmem:[#allocation2 + $0xd0] ss:$8 sps:$4 sm:$0xff]   ;;  %v1672_v12 = vld [vmem:[#allocation2 + $0xe4] ss:$8 sps:$4 sm:$0xff]  }
  0x51   :  { %472 = vmatpush1.bf16.msra.mxu0 %v1602_v14  ;;  %1470 = vmatprep.subr.bf16.mxu1 %v1686_v44  ;;  %v1674_v13 = vld [vmem:[#allocation2 + $0xe0] ss:$8 sps:$4 sm:$0xff]   ;;  %v1675_v14 = vld [vmem:[#allocation2 + $0xf4] ss:$8 sps:$4 sm:$0xff]  }
  0x52   :  { %473 = vmatprep.subr.bf16.mxu0 %v1603_v15  ;;  %v1677_v15 = vld [vmem:[#allocation2 + $0xf0] ss:$8 sps:$4 sm:$0xff]  }
  0x54   :  { %1471 = vmatpush3.bf16.msra.mxu1 %v1687_v46 }
  0x55   :  { %474 = vmatpush1.bf16.msra.mxu0 %v1605_v16  ;;  %1472 = vmatprep.subr.bf16.mxu1 %v1688_v47  ;;  %v129_v16 = vlaneseq }
  0x56   :  { %475 = vmatprep.subr.bf16.mxu0 %v1606_v17 }
  0x57   :  { %v130_v17 = vshrl.u32 %v129_v16, 7 }
  0x58   :  { %1473 = vmatpush3.bf16.msra.mxu1 %v1689_v2 }
  0x59   :  { %476 = vmatpush1.bf16.msra.mxu0 %v1608_v18  ;;  %1474 = vmatprep.subr.bf16.mxu1 %v1690_v4  ;;  %v131_v18 = vsub.s32 0, %v130_v17 }
  0x5a   :  { %477 = vmatprep.subr.bf16.mxu0 %v1609_v19  ;;  %v127_v19 = vld [vmem:[%s1997_s2] sm:$0x3] }
  0x5c   :  { %1475 = vmatpush3.bf16.msra.mxu1 %v1691_v6 }
  0x5d   :  { %478 = vmatpush1.bf16.msra.mxu0 %v1611_v20  ;;  %1476 = vmatprep.subr.bf16.mxu1 %v1692_v7  ;;  %v135_v20 = vsub.s32 1, %v130_v17 }
  0x5e   :  { %479 = vmatprep.subr.bf16.mxu0 %v1612_v21  ;;  %v1875_v21 = vrot.slane %v127_v19, %v131_v18 }
  0x60   :  { %1477 = vmatpush3.bf16.msra.mxu1 %v1693_v8 }
  0x61   :  { %480 = vmatpush1.bf16.msra.mxu0 %v1614_v22  ;;  %v1877_v22 = vrot.slane %v127_v19, %v135_v20 }
  0x62   :  { %481 = vmatprep.subr.bf16.mxu0 %v1615_v23 }
  0x65   :  { %482 = vmatpush1.bf16.msra.mxu0 %v1617_v24 }
  0x66   :  { %483 = vmatprep.subr.bf16.mxu0 %v1618_v25 }
  0x69   :  { %484 = vmatpush1.bf16.msra.mxu0 %v1620_v26 }
  0x6a   :  { %485 = vmatprep.subr.bf16.mxu0 %v1621_v27 }
  0x6d   :  { %486 = vmatpush1.bf16.msra.mxu0 %v1623_v28 }
  0x6e   :  { %487 = vmatprep.subr.bf16.mxu0 %v1624_v29 }
  0x71   :  { %488 = vmatpush1.bf16.msra.mxu0 %v1626_v30 }
  0x72   :  { %489 = vmatprep.subr.bf16.mxu0 %v1627_v31 }
  0x75   :  { %490 = vmatpush1.bf16.msra.mxu0 %v1629_v35 }
  0x78   :  { %492 = vmatmul.mubr.bf16.vlgmr.msra.gmra.mrb[0].mxu0 %v1630_v37 }
  0x79   :  { %501 = vmatprep.mubr.bf16.mxu0 %v1633_v39 }
  0x80   :  { %502 = vmatmul.mubr.bf16.gmra.mrb[4].mxu0 %v1635_v43 }
  0x81   :  { %511 = vmatprep.mubr.bf16.mxu0 %v1636_v45 }
  0x88   :  { %512 = vmatmul.mubr.bf16.gmra.mrb[8].mxu0 %v1638_v48 }
  0x89   :  { %521 = vmatprep.mubr.bf16.mxu0 %v1639_v49 }
  0x90   :  { %522 = vmatmul.mubr.bf16.gmra.mrb[12].mxu0 %v1641_v50 }
  0x91   :  { %531 = vmatprep.mubr.bf16.mxu0 %v1642_v51 }
  0x98   :  { %532 = vmatmul.mubr.bf16.gmra.mrb[16].mxu0 %v1644_v52 }
  0x99   :  { %541 = vmatprep.mubr.bf16.mxu0 %v1645_v53 }
  0xa0   :  { %542 = vmatmul.mubr.bf16.gmra.mrb[20].mxu0 %v1647_v54 }
  0xa1   :  { %551 = vmatprep.mubr.bf16.mxu0 %v1648_v55 }
  0xa8   :  { %552 = vmatmul.mubr.bf16.gmra.mrb[24].mxu0 %v1650_v56 }
  0xa9   :  { %561 = vmatprep.mubr.bf16.mxu0 %v1651_v57 }
  0xb0   :  { %562 = vmatmul.mubr.bf16.gmra.mrb[28].mxu0 %v1653_v58 }
  0xb1   :  { %571 = vmatprep.mubr.bf16.mxu0 %v1654_v59 }
  0xb8   :  { %572 = vmatmul.mubr.bf16.gmra.mrb[32].mxu0 %v1656_v60 }
  0xb9   :  { %581 = vmatprep.mubr.bf16.mxu0 %v1657_v61 }
  0xc0   :  { %582 = vmatmul.mubr.bf16.gmra.mrb[36].mxu0 %v1659_v62 }
  0xc1   :  { %591 = vmatprep.mubr.bf16.mxu0 %v1660_v63 }
  0xc8   :  { %592 = vmatmul.mubr.bf16.gmra.mrb[40].mxu0 %v1662_v0 }
  0xc9   :  { %601 = vmatprep.mubr.bf16.mxu0 %v1663_v1 }
  0xd0   :  { %602 = vmatmul.mubr.bf16.gmra.mrb[44].mxu0 %v1665_v3 }
  0xd1   :  { %611 = vmatprep.mubr.bf16.mxu0 %v1666_v5 }
  0xd8   :  { %612 = vmatmul.mubr.bf16.gmra.mrb[48].mxu0 %v1668_v9 }
  0xd9   :  { %621 = vmatprep.mubr.bf16.mxu0 %v1669_v10 }
  0xe0   :  { %622 = vmatmul.mubr.bf16.gmra.mrb[52].mxu0 %v1671_v11 }
  0xe1   :  { %631 = vmatprep.mubr.bf16.mxu0 %v1672_v12 }
  0xe8   :  { %632 = vmatmul.mubr.bf16.gmra.mrb[56].mxu0 %v1674_v13 }
  0xe9   :  { %641 = vmatprep.mubr.bf16.mxu0 %v1675_v14 }
  0xf0   :  { %642 = vmatmul.mubr.bf16.gmra.mrb[60].mxu0 %v1677_v15 }
 0x14b   :  { %v493_v23 = vpop.f32.mrb[0].mxu0 }
 0x14c   :  { %v494_v24 = vadd.f32 %v493_v23, %v1875_v21  ;;  %v495_v25 = vpop.f32.mrb[1].mxu0 }
 0x14d   :  { %v496_v26 = vadd.f32 %v495_v25, %v1877_v22  ;;  %v497_v27 = vpop.f32.mrb[2].mxu0 }
 0x14e   :  { %v498_v28 = vadd.f32 %v497_v27, %v1875_v21  ;;  %v499_v29 = vpop.f32.mrb[3].mxu0  ;;  %v652_v31 = vmax.f32 %v494_v24, 0.0 }
 0x14f   :  { %v500_v30 = vadd.f32 %v499_v29, %v1877_v22  ;;  %v653_v33 = vmax.f32 %v496_v26, 0.0 }
 0x150   :  { %v654_v32 = vmax.f32 %v498_v28, 0.0 }
 0x151   :  { %v655_v34 = vmax.f32 %v500_v30, 0.0 }
 0x152   :  { %v716_v35 = vpack.c.bf16 %v654_v32, %v652_v31 }
 0x153   :  { %v503_v36 = vpop.f32.mrb[4].mxu0  ;;  %v717_v37 = vpack.c.bf16 %v655_v34, %v653_v33 }
 0x154   :  { %v504_v38 = vadd.f32 %v503_v36, %v1875_v21  ;;  %v505_v39 = vpop.f32.mrb[5].mxu0 }
 0x155   :  { %v506_v40 = vadd.f32 %v505_v39, %v1877_v22  ;;  %v507_v41 = vpop.f32.mrb[6].mxu0  ;;  %915 = vmatprep.mubr.bf16.mxu1 %v717_v37 }
 0x156   :  { %v508_v42 = vadd.f32 %v507_v41, %v1875_v21  ;;  %v509_v43 = vpop.f32.mrb[7].mxu0  ;;  %916 = vmatmul.mubr.bf16.vlgmr.msra.gmra.mrb[0].mxu1 %v716_v35  ;;  %v656_v45 = vmax.f32 %v504_v38, 0.0 }
 0x157   :  { %v510_v44 = vadd.f32 %v509_v43, %v1877_v22  ;;  %v657_v47 = vmax.f32 %v506_v40, 0.0 }
 0x158   :  { %v658_v46 = vmax.f32 %v508_v42, 0.0 }
 0x159   :  { %v659_v48 = vmax.f32 %v510_v44, 0.0 }
 0x15a   :  { %v718_v49 = vpack.c.bf16 %v658_v46, %v656_v45 }
 0x15b   :  { %v719_v50 = vpack.c.bf16 %v659_v48, %v657_v47  ;;  %v513_v51 = vpop.f32.mrb[8].mxu0 }
 0x15c   :  { %v514_v52 = vadd.f32 %v513_v51, %v1875_v21  ;;  %v515_v53 = vpop.f32.mrb[9].mxu0 }
 0x15d   :  { %v516_v54 = vadd.f32 %v515_v53, %v1877_v22  ;;  %v517_v55 = vpop.f32.mrb[10].mxu0  ;;  %923 = vmatprep.mubr.bf16.mxu1 %v719_v50 }
 0x15e   :  { %v518_v56 = vadd.f32 %v517_v55, %v1875_v21  ;;  %v519_v57 = vpop.f32.mrb[11].mxu0  ;;  %924 = vmatmul.mubr.bf16.gmra.mrb[4].mxu1 %v718_v49  ;;  %v660_v59 = vmax.f32 %v514_v52, 0.0 }
 0x15f   :  { %v520_v58 = vadd.f32 %v519_v57, %v1877_v22  ;;  %v661_v61 = vmax.f32 %v516_v54, 0.0 }
 0x160   :  { %v662_v60 = vmax.f32 %v518_v56, 0.0 }
 0x161   :  { %v663_v62 = vmax.f32 %v520_v58, 0.0 }
 0x162   :  { %v720_v63 = vpack.c.bf16 %v662_v60, %v660_v59 }
 0x163   :  { %v721_v0 = vpack.c.bf16 %v663_v62, %v661_v61  ;;  %v523_v1 = vpop.f32.mrb[12].mxu0 }
 0x164   :  { %v524_v2 = vadd.f32 %v523_v1, %v1875_v21  ;;  %v525_v3 = vpop.f32.mrb[13].mxu0 }
 0x165   :  { %v526_v4 = vadd.f32 %v525_v3, %v1877_v22  ;;  %v527_v5 = vpop.f32.mrb[14].mxu0  ;;  %931 = vmatprep.mubr.bf16.mxu1 %v721_v0 }
 0x166   :  { %v528_v6 = vadd.f32 %v527_v5, %v1875_v21  ;;  %v529_v7 = vpop.f32.mrb[15].mxu0  ;;  %932 = vmatmul.mubr.bf16.gmra.mrb[8].mxu1 %v720_v63  ;;  %v664_v9 = vmax.f32 %v524_v2, 0.0 }
 0x167   :  { %v530_v8 = vadd.f32 %v529_v7, %v1877_v22  ;;  %v665_v11 = vmax.f32 %v526_v4, 0.0 }
 0x168   :  { %v666_v10 = vmax.f32 %v528_v6, 0.0 }
 0x169   :  { %v667_v12 = vmax.f32 %v530_v8, 0.0 }
 0x16a   :  { %v722_v13 = vpack.c.bf16 %v666_v10, %v664_v9 }
 0x16b   :  { %v723_v14 = vpack.c.bf16 %v667_v12, %v665_v11  ;;  %v533_v15 = vpop.f32.mrb[16].mxu0 }
 0x16c   :  { %v534_v16 = vadd.f32 %v533_v15, %v1875_v21  ;;  %v535_v17 = vpop.f32.mrb[17].mxu0 }
 0x16d   :  { %v536_v18 = vadd.f32 %v535_v17, %v1877_v22  ;;  %v537_v19 = vpop.f32.mrb[18].mxu0  ;;  %939 = vmatprep.mubr.bf16.mxu1 %v723_v14 }
 0x16e   :  { %v538_v20 = vadd.f32 %v537_v19, %v1875_v21  ;;  %v539_v23 = vpop.f32.mrb[19].mxu0  ;;  %940 = vmatmul.mubr.bf16.gmra.mrb[12].mxu1 %v722_v13  ;;  %v668_v25 = vmax.f32 %v534_v16, 0.0 }
 0x16f   :  { %v540_v24 = vadd.f32 %v539_v23, %v1877_v22  ;;  %v669_v27 = vmax.f32 %v536_v18, 0.0 }
 0x170   :  { %v670_v26 = vmax.f32 %v538_v20, 0.0 }
 0x171   :  { %v671_v28 = vmax.f32 %v540_v24, 0.0 }
 0x172   :  { %v724_v29 = vpack.c.bf16 %v670_v26, %v668_v25 }
 0x173   :  { %v725_v30 = vpack.c.bf16 %v671_v28, %v669_v27  ;;  %v543_v31 = vpop.f32.mrb[20].mxu0 }
 0x174   :  { %v544_v32 = vadd.f32 %v543_v31, %v1875_v21  ;;  %v545_v33 = vpop.f32.mrb[21].mxu0 }
 0x175   :  { %v546_v34 = vadd.f32 %v545_v33, %v1877_v22  ;;  %v547_v35 = vpop.f32.mrb[22].mxu0  ;;  %947 = vmatprep.mubr.bf16.mxu1 %v725_v30 }
 0x176   :  { %v548_v36 = vadd.f32 %v547_v35, %v1875_v21  ;;  %v549_v37 = vpop.f32.mrb[23].mxu0  ;;  %948 = vmatmul.mubr.bf16.gmra.mrb[16].mxu1 %v724_v29  ;;  %v672_v39 = vmax.f32 %v544_v32, 0.0 }
 0x177   :  { %v550_v38 = vadd.f32 %v549_v37, %v1877_v22  ;;  %v673_v41 = vmax.f32 %v546_v34, 0.0 }
 0x178   :  { %v674_v40 = vmax.f32 %v548_v36, 0.0 }
 0x179   :  { %v675_v42 = vmax.f32 %v550_v38, 0.0 }
 0x17a   :  { %v726_v43 = vpack.c.bf16 %v674_v40, %v672_v39 }
 0x17b   :  { %v727_v44 = vpack.c.bf16 %v675_v42, %v673_v41  ;;  %v553_v45 = vpop.f32.mrb[24].mxu0 }
 0x17c   :  { %v554_v46 = vadd.f32 %v553_v45, %v1875_v21  ;;  %v555_v47 = vpop.f32.mrb[25].mxu0 }
 0x17d   :  { %v556_v48 = vadd.f32 %v555_v47, %v1877_v22  ;;  %v557_v49 = vpop.f32.mrb[26].mxu0  ;;  %955 = vmatprep.mubr.bf16.mxu1 %v727_v44 }
 0x17e   :  { %v558_v50 = vadd.f32 %v557_v49, %v1875_v21  ;;  %v559_v51 = vpop.f32.mrb[27].mxu0  ;;  %956 = vmatmul.mubr.bf16.gmra.mrb[20].mxu1 %v726_v43  ;;  %v676_v53 = vmax.f32 %v554_v46, 0.0 }
 0x17f   :  { %v560_v52 = vadd.f32 %v559_v51, %v1877_v22  ;;  %v677_v55 = vmax.f32 %v556_v48, 0.0 }
 0x180   :  { %v678_v54 = vmax.f32 %v558_v50, 0.0 }
 0x181   :  { %v679_v56 = vmax.f32 %v560_v52, 0.0 }
 0x182   :  { %v728_v57 = vpack.c.bf16 %v678_v54, %v676_v53 }
 0x183   :  { %v729_v58 = vpack.c.bf16 %v679_v56, %v677_v55  ;;  %v563_v59 = vpop.f32.mrb[28].mxu0 }
 0x184   :  { %v564_v60 = vadd.f32 %v563_v59, %v1875_v21  ;;  %v565_v61 = vpop.f32.mrb[29].mxu0 }
 0x185   :  { %v566_v62 = vadd.f32 %v565_v61, %v1877_v22  ;;  %v567_v63 = vpop.f32.mrb[30].mxu0  ;;  %963 = vmatprep.mubr.bf16.mxu1 %v729_v58 }
 0x186   :  { %v568_v0 = vadd.f32 %v567_v63, %v1875_v21  ;;  %v569_v1 = vpop.f32.mrb[31].mxu0  ;;  %964 = vmatmul.mubr.bf16.gmra.mrb[24].mxu1 %v728_v57  ;;  %v680_v3 = vmax.f32 %v564_v60, 0.0 }
 0x187   :  { %v570_v2 = vadd.f32 %v569_v1, %v1877_v22  ;;  %v681_v5 = vmax.f32 %v566_v62, 0.0 }
 0x188   :  { %v682_v4 = vmax.f32 %v568_v0, 0.0 }
 0x189   :  { %v683_v6 = vmax.f32 %v570_v2, 0.0 }
 0x18a   :  { %v730_v7 = vpack.c.bf16 %v682_v4, %v680_v3 }
 0x18b   :  { %v731_v8 = vpack.c.bf16 %v683_v6, %v681_v5  ;;  %v573_v9 = vpop.f32.mrb[32].mxu0 }
 0x18c   :  { %v574_v10 = vadd.f32 %v573_v9, %v1875_v21  ;;  %v575_v11 = vpop.f32.mrb[33].mxu0 }
 0x18d   :  { %v576_v12 = vadd.f32 %v575_v11, %v1877_v22  ;;  %v577_v13 = vpop.f32.mrb[34].mxu0  ;;  %971 = vmatprep.mubr.bf16.mxu1 %v731_v8 }
 0x18e   :  { %v578_v14 = vadd.f32 %v577_v13, %v1875_v21  ;;  %v579_v15 = vpop.f32.mrb[35].mxu0  ;;  %972 = vmatmul.mubr.bf16.gmra.mrb[28].mxu1 %v730_v7  ;;  %v684_v17 = vmax.f32 %v574_v10, 0.0 }
 0x18f   :  { %v580_v16 = vadd.f32 %v579_v15, %v1877_v22  ;;  %v685_v19 = vmax.f32 %v576_v12, 0.0 }
 0x190   :  { %v686_v18 = vmax.f32 %v578_v14, 0.0 }
 0x191   :  { %v687_v20 = vmax.f32 %v580_v16, 0.0 }
 0x192   :  { %v732_v23 = vpack.c.bf16 %v686_v18, %v684_v17 }
 0x193   :  { %v733_v24 = vpack.c.bf16 %v687_v20, %v685_v19  ;;  %v583_v25 = vpop.f32.mrb[36].mxu0 }
 0x194   :  { %v584_v26 = vadd.f32 %v583_v25, %v1875_v21  ;;  %v585_v27 = vpop.f32.mrb[37].mxu0 }
 0x195   :  { %v586_v28 = vadd.f32 %v585_v27, %v1877_v22  ;;  %v587_v29 = vpop.f32.mrb[38].mxu0  ;;  %979 = vmatprep.mubr.bf16.mxu1 %v733_v24 }
 0x196   :  { %v588_v30 = vadd.f32 %v587_v29, %v1875_v21  ;;  %v589_v31 = vpop.f32.mrb[39].mxu0  ;;  %980 = vmatmul.mubr.bf16.gmra.mrb[32].mxu1 %v732_v23  ;;  %v688_v33 = vmax.f32 %v584_v26, 0.0 }
 0x197   :  { %v590_v32 = vadd.f32 %v589_v31, %v1877_v22  ;;  %v689_v35 = vmax.f32 %v586_v28, 0.0 }
 0x198   :  { %v690_v34 = vmax.f32 %v588_v30, 0.0 }
 0x199   :  { %v691_v36 = vmax.f32 %v590_v32, 0.0 }
 0x19a   :  { %v734_v37 = vpack.c.bf16 %v690_v34, %v688_v33 }
 0x19b   :  { %v735_v38 = vpack.c.bf16 %v691_v36, %v689_v35  ;;  %v593_v39 = vpop.f32.mrb[40].mxu0 }
 0x19c   :  { %v594_v40 = vadd.f32 %v593_v39, %v1875_v21  ;;  %v595_v41 = vpop.f32.mrb[41].mxu0 }
 0x19d   :  { %v596_v42 = vadd.f32 %v595_v41, %v1877_v22  ;;  %v597_v43 = vpop.f32.mrb[42].mxu0  ;;  %987 = vmatprep.mubr.bf16.mxu1 %v735_v38 }
 0x19e   :  { %v598_v44 = vadd.f32 %v597_v43, %v1875_v21  ;;  %v599_v45 = vpop.f32.mrb[43].mxu0  ;;  %988 = vmatmul.mubr.bf16.gmra.mrb[36].mxu1 %v734_v37  ;;  %v692_v47 = vmax.f32 %v594_v40, 0.0 }
 0x19f   :  { %v600_v46 = vadd.f32 %v599_v45, %v1877_v22  ;;  %v693_v49 = vmax.f32 %v596_v42, 0.0 }
 0x1a0   :  { %v694_v48 = vmax.f32 %v598_v44, 0.0 }
 0x1a1   :  { %v695_v50 = vmax.f32 %v600_v46, 0.0 }
 0x1a2   :  { %v736_v51 = vpack.c.bf16 %v694_v48, %v692_v47 }
 0x1a3   :  { %v737_v52 = vpack.c.bf16 %v695_v50, %v693_v49  ;;  %v603_v53 = vpop.f32.mrb[44].mxu0 }
 0x1a4   :  { %v604_v54 = vadd.f32 %v603_v53, %v1875_v21  ;;  %v605_v55 = vpop.f32.mrb[45].mxu0 }
 0x1a5   :  { %v606_v56 = vadd.f32 %v605_v55, %v1877_v22  ;;  %v607_v57 = vpop.f32.mrb[46].mxu0  ;;  %995 = vmatprep.mubr.bf16.mxu1 %v737_v52 }
 0x1a6   :  { %v608_v58 = vadd.f32 %v607_v57, %v1875_v21  ;;  %v609_v59 = vpop.f32.mrb[47].mxu0  ;;  %996 = vmatmul.mubr.bf16.gmra.mrb[40].mxu1 %v736_v51  ;;  %v696_v61 = vmax.f32 %v604_v54, 0.0 }
 0x1a7   :  { %v610_v60 = vadd.f32 %v609_v59, %v1877_v22  ;;  %v697_v63 = vmax.f32 %v606_v56, 0.0 }
 0x1a8   :  { %v698_v62 = vmax.f32 %v608_v58, 0.0 }
 0x1a9   :  { %v699_v0 = vmax.f32 %v610_v60, 0.0 }
 0x1aa   :  { %v738_v1 = vpack.c.bf16 %v698_v62, %v696_v61 }
 0x1ab   :  { %v739_v2 = vpack.c.bf16 %v699_v0, %v697_v63  ;;  %v613_v3 = vpop.f32.mrb[48].mxu0 }
 0x1ac   :  { %v614_v4 = vadd.f32 %v613_v3, %v1875_v21  ;;  %v615_v5 = vpop.f32.mrb[49].mxu0 }
 0x1ad   :  { %v616_v6 = vadd.f32 %v615_v5, %v1877_v22  ;;  %v617_v7 = vpop.f32.mrb[50].mxu0  ;;  %1003 = vmatprep.mubr.bf16.mxu1 %v739_v2 }
 0x1ae   :  { %v618_v8 = vadd.f32 %v617_v7, %v1875_v21  ;;  %v619_v9 = vpop.f32.mrb[51].mxu0  ;;  %1004 = vmatmul.mubr.bf16.gmra.mrb[44].mxu1 %v738_v1  ;;  %v700_v11 = vmax.f32 %v614_v4, 0.0 }
 0x1af   :  { %v620_v10 = vadd.f32 %v619_v9, %v1877_v22  ;;  %v701_v13 = vmax.f32 %v616_v6, 0.0 }
 0x1b0   :  { %v702_v12 = vmax.f32 %v618_v8, 0.0 }
 0x1b1   :  { %v703_v14 = vmax.f32 %v620_v10, 0.0 }
 0x1b2   :  { %v740_v15 = vpack.c.bf16 %v702_v12, %v700_v11 }
 0x1b3   :  { %v741_v16 = vpack.c.bf16 %v703_v14, %v701_v13  ;;  %v623_v17 = vpop.f32.mrb[52].mxu0 }
 0x1b4   :  { %v624_v18 = vadd.f32 %v623_v17, %v1875_v21  ;;  %v625_v19 = vpop.f32.mrb[53].mxu0 }
 0x1b5   :  { %v626_v20 = vadd.f32 %v625_v19, %v1877_v22  ;;  %v627_v23 = vpop.f32.mrb[54].mxu0  ;;  %1011 = vmatprep.mubr.bf16.mxu1 %v741_v16 }
 0x1b6   :  { %v628_v24 = vadd.f32 %v627_v23, %v1875_v21  ;;  %v629_v25 = vpop.f32.mrb[55].mxu0  ;;  %1012 = vmatmul.mubr.bf16.gmra.mrb[48].mxu1 %v740_v15  ;;  %v704_v27 = vmax.f32 %v624_v18, 0.0 }
 0x1b7   :  { %v630_v26 = vadd.f32 %v629_v25, %v1877_v22  ;;  %v705_v29 = vmax.f32 %v626_v20, 0.0 }
 0x1b8   :  { %v706_v28 = vmax.f32 %v628_v24, 0.0 }
 0x1b9   :  { %v707_v30 = vmax.f32 %v630_v26, 0.0 }
 0x1ba   :  { %v742_v31 = vpack.c.bf16 %v706_v28, %v704_v27 }
 0x1bb   :  { %v743_v32 = vpack.c.bf16 %v707_v30, %v705_v29  ;;  %v633_v33 = vpop.f32.mrb[56].mxu0 }
 0x1bc   :  { %v634_v34 = vadd.f32 %v633_v33, %v1875_v21  ;;  %v635_v35 = vpop.f32.mrb[57].mxu0 }
 0x1bd   :  { %v636_v36 = vadd.f32 %v635_v35, %v1877_v22  ;;  %v637_v37 = vpop.f32.mrb[58].mxu0  ;;  %1019 = vmatprep.mubr.bf16.mxu1 %v743_v32 }
 0x1be   :  { %v638_v38 = vadd.f32 %v637_v37, %v1875_v21  ;;  %v639_v39 = vpop.f32.mrb[59].mxu0  ;;  %1020 = vmatmul.mubr.bf16.gmra.mrb[52].mxu1 %v742_v31  ;;  %v708_v41 = vmax.f32 %v634_v34, 0.0 }
 0x1bf   :  { %v640_v40 = vadd.f32 %v639_v39, %v1877_v22  ;;  %v709_v43 = vmax.f32 %v636_v36, 0.0 }
 0x1c0   :  { %v710_v42 = vmax.f32 %v638_v38, 0.0 }
 0x1c1   :  { %v711_v44 = vmax.f32 %v640_v40, 0.0 }
 0x1c2   :  { %v744_v45 = vpack.c.bf16 %v710_v42, %v708_v41 }
 0x1c3   :  { %v745_v46 = vpack.c.bf16 %v711_v44, %v709_v43  ;;  %v643_v47 = vpop.f32.mrb[60].mxu0 }
 0x1c4   :  { %v644_v48 = vadd.f32 %v643_v47, %v1875_v21  ;;  %v645_v49 = vpop.f32.mrb[61].mxu0 }
 0x1c5   :  { %v646_v50 = vadd.f32 %v645_v49, %v1877_v22  ;;  %v647_v51 = vpop.f32.mrb[62].mxu0  ;;  %1027 = vmatprep.mubr.bf16.mxu1 %v745_v46 }
 0x1c6   :  { %v648_v52 = vadd.f32 %v647_v51, %v1875_v21  ;;  %v649_v53 = vpop.f32.mrb[63].mxu0  ;;  %1028 = vmatmul.mubr.bf16.gmra.mrb[56].mxu1 %v744_v45  ;;  %v712_v55 = vmax.f32 %v644_v48, 0.0  ;;  %v1946_v21 = vld [vmem:[%s1999_s4] ss:$0 sm:$0xff]  ;;  %s1795_s4 = smov [#allocation8]  }
 0x1c7   :  { %v650_v54 = vadd.f32 %v649_v53, %v1877_v22  ;;  %v713_v57 = vmax.f32 %v646_v50, 0.0  ;;  %s1209_s8 = sshll.u32 %s1795_s4, 4  ;;  %s1210_s8 = int_to_ptr.vmem [resolvable:$true] %s1209_s8 }
 0x1c8   :  { %v714_v56 = vmax.f32 %v648_v52, 0.0  ;;  %s1760_s9 = scalar_lea.vmem %s1210_s8, 2048  ;;  %p1765_p11 = scmp.lt.s32.totalorder %s1210_s8, %s1210_s8 }
 0x1c9   :  { %v715_v58 = vmax.f32 %v650_v54, 0.0  ;;  %p1761_p10 = scmp.ne.s32.totalorder %s1210_s8, %s1760_s9  ;;  %p1766_p12 = scmp.lt.s32.totalorder %s1760_s9, %s1760_s9 }
 0x1ca   :  { %v746_v59 = vpack.c.bf16 %v714_v56, %v712_v55 }
 0x1cb   :  { %v747_v60 = vpack.c.bf16 %v715_v58, %v713_v57  ;;  %p1767_p13 = por %p1766_p12, %p1765_p11 }
 0x1cd   :  { %1035 = vmatprep.mubr.bf16.mxu1 %v747_v60  ;;  %p1768_p0 = pnand %p1767_p13, %p1761_p10 }
 0x1ce   :  { %1036 = vmatmul.mubr.bf16.gmra.mrb[60].mxu1 %v746_v59 }
 0x229   :  { %v1478_v61 = vpop.f32.mrb[0].mxu1 }
 0x22a   :  { %v1479_v62 = vpop.f32.mrb[1].mxu1 }
 0x22b   :  { %v1480_v63 = vadd.f32 %v1479_v62, %v1478_v61  ;;  %v1481_v0 = vpop.f32.mrb[2].mxu1 }
 0x22c   :  { %v1482_v1 = vpop.f32.mrb[3].mxu1 }
 0x22d   :  { %v1483_v2 = vadd.f32 %v1482_v1, %v1481_v0  ;;  %v918_v22 = vadd.f32 %v1480_v63, %v1946_v21 }
 0x22f   :  { %v921_v3 = vadd.f32 %v1483_v2, %v1946_v21 }
 0x231   :  { %v1370_v4 = vpack.c.bf16 %v921_v3, %v918_v22  ;;  %v1484_v5 = vpop.f32.mrb[4].mxu1 }
 0x232   :  { %v1485_v6 = vpop.f32.mrb[5].mxu1 }
 0x233   :  { %1371 = vst [vmem:[#allocation8] sm:$0xff] %v1370_v4   ;;  %v1486_v7 = vadd.f32 %v1485_v6, %v1484_v5  ;;  %v1487_v8 = vpop.f32.mrb[6].mxu1 }
 0x234   :  { %v1488_v9 = vpop.f32.mrb[7].mxu1 }
 0x235   :  { %v1489_v10 = vadd.f32 %v1488_v9, %v1487_v8  ;;  %v926_v11 = vadd.f32 %v1486_v7, %v1946_v21 }
 0x237   :  { %v929_v12 = vadd.f32 %v1489_v10, %v1946_v21 }
 0x239   :  { %v1375_v13 = vpack.c.bf16 %v929_v12, %v926_v11  ;;  %v1490_v14 = vpop.f32.mrb[8].mxu1 }
 0x23a   :  { %v1491_v15 = vpop.f32.mrb[9].mxu1 }
 0x23b   :  { %1447 = vst [vmem:[#allocation8 + $0x8] sm:$0xff] %v1375_v13   ;;  %v1492_v16 = vadd.f32 %v1491_v15, %v1490_v14  ;;  %v1493_v17 = vpop.f32.mrb[10].mxu1 }
 0x23c   :  { %v1494_v18 = vpop.f32.mrb[11].mxu1 }
 0x23d   :  { %v1495_v19 = vadd.f32 %v1494_v18, %v1493_v17  ;;  %v934_v20 = vadd.f32 %v1492_v16, %v1946_v21 }
 0x23f   :  { %v937_v23 = vadd.f32 %v1495_v19, %v1946_v21 }
 0x241   :  { %v1380_v24 = vpack.c.bf16 %v937_v23, %v934_v20  ;;  %v1496_v25 = vpop.f32.mrb[12].mxu1 }
 0x242   :  { %v1497_v26 = vpop.f32.mrb[13].mxu1 }
 0x243   :  { %1448 = vst [vmem:[#allocation8 + $0x10] sm:$0xff] %v1380_v24   ;;  %v1498_v27 = vadd.f32 %v1497_v26, %v1496_v25  ;;  %v1499_v28 = vpop.f32.mrb[14].mxu1 }
 0x244   :  { %v1500_v29 = vpop.f32.mrb[15].mxu1 }
 0x245   :  { %v1501_v30 = vadd.f32 %v1500_v29, %v1499_v28  ;;  %v942_v31 = vadd.f32 %v1498_v27, %v1946_v21 }
 0x247   :  { %v945_v32 = vadd.f32 %v1501_v30, %v1946_v21 }
 0x249   :  { %v1385_v33 = vpack.c.bf16 %v945_v32, %v942_v31  ;;  %v1502_v34 = vpop.f32.mrb[16].mxu1 }
 0x24a   :  { %v1503_v35 = vpop.f32.mrb[17].mxu1 }
 0x24b   :  { %1449 = vst [vmem:[#allocation8 + $0x18] sm:$0xff] %v1385_v33   ;;  %v1504_v36 = vadd.f32 %v1503_v35, %v1502_v34  ;;  %v1505_v37 = vpop.f32.mrb[18].mxu1 }
 0x24c   :  { %v1506_v38 = vpop.f32.mrb[19].mxu1 }
 0x24d   :  { %v1507_v39 = vadd.f32 %v1506_v38, %v1505_v37  ;;  %v950_v40 = vadd.f32 %v1504_v36, %v1946_v21 }
 0x24f   :  { %v953_v41 = vadd.f32 %v1507_v39, %v1946_v21 }
 0x251   :  { %v1390_v42 = vpack.c.bf16 %v953_v41, %v950_v40  ;;  %v1508_v43 = vpop.f32.mrb[20].mxu1 }
 0x252   :  { %v1509_v44 = vpop.f32.mrb[21].mxu1 }
 0x253   :  { %1450 = vst [vmem:[#allocation8 + $0x20] sm:$0xff] %v1390_v42   ;;  %v1510_v45 = vadd.f32 %v1509_v44, %v1508_v43  ;;  %v1511_v46 = vpop.f32.mrb[22].mxu1 }
 0x254   :  { %v1512_v47 = vpop.f32.mrb[23].mxu1 }
 0x255   :  { %v1513_v48 = vadd.f32 %v1512_v47, %v1511_v46  ;;  %v958_v49 = vadd.f32 %v1510_v45, %v1946_v21 }
 0x257   :  { %v961_v50 = vadd.f32 %v1513_v48, %v1946_v21 }
 0x259   :  { %v1395_v51 = vpack.c.bf16 %v961_v50, %v958_v49  ;;  %v1514_v52 = vpop.f32.mrb[24].mxu1 }
 0x25a   :  { %v1515_v53 = vpop.f32.mrb[25].mxu1 }
 0x25b   :  { %1451 = vst [vmem:[#allocation8 + $0x28] sm:$0xff] %v1395_v51   ;;  %v1516_v54 = vadd.f32 %v1515_v53, %v1514_v52  ;;  %v1517_v55 = vpop.f32.mrb[26].mxu1 }
 0x25c   :  { %v1518_v56 = vpop.f32.mrb[27].mxu1 }
 0x25d   :  { %v1519_v57 = vadd.f32 %v1518_v56, %v1517_v55  ;;  %v966_v58 = vadd.f32 %v1516_v54, %v1946_v21 }
 0x25f   :  { %v969_v59 = vadd.f32 %v1519_v57, %v1946_v21 }
 0x261   :  { %v1400_v60 = vpack.c.bf16 %v969_v59, %v966_v58  ;;  %v1520_v61 = vpop.f32.mrb[28].mxu1 }
 0x262   :  { %v1521_v62 = vpop.f32.mrb[29].mxu1 }
 0x263   :  { %1452 = vst [vmem:[#allocation8 + $0x30] sm:$0xff] %v1400_v60   ;;  %v1522_v63 = vadd.f32 %v1521_v62, %v1520_v61  ;;  %v1523_v0 = vpop.f32.mrb[30].mxu1 }
 0x264   :  { %v1524_v1 = vpop.f32.mrb[31].mxu1 }
 0x265   :  { %v1525_v2 = vadd.f32 %v1524_v1, %v1523_v0  ;;  %v974_v22 = vadd.f32 %v1522_v63, %v1946_v21 }
 0x267   :  { %v977_v3 = vadd.f32 %v1525_v2, %v1946_v21 }
 0x269   :  { %v1405_v4 = vpack.c.bf16 %v977_v3, %v974_v22  ;;  %v1526_v5 = vpop.f32.mrb[32].mxu1 }
 0x26a   :  { %v1527_v6 = vpop.f32.mrb[33].mxu1 }
 0x26b   :  { %1453 = vst [vmem:[#allocation8 + $0x38] sm:$0xff] %v1405_v4   ;;  %v1528_v7 = vadd.f32 %v1527_v6, %v1526_v5  ;;  %v1529_v8 = vpop.f32.mrb[34].mxu1 }
 0x26c   :  { %v1530_v9 = vpop.f32.mrb[35].mxu1 }
 0x26d   :  { %v1531_v10 = vadd.f32 %v1530_v9, %v1529_v8  ;;  %v982_v11 = vadd.f32 %v1528_v7, %v1946_v21 }
 0x26f   :  { %v985_v12 = vadd.f32 %v1531_v10, %v1946_v21 }
 0x271   :  { %v1410_v13 = vpack.c.bf16 %v985_v12, %v982_v11  ;;  %v1532_v14 = vpop.f32.mrb[36].mxu1 }
 0x272   :  { %v1533_v15 = vpop.f32.mrb[37].mxu1 }
 0x273   :  { %1454 = vst [vmem:[#allocation8 + $0x40] sm:$0xff] %v1410_v13   ;;  %v1534_v16 = vadd.f32 %v1533_v15, %v1532_v14  ;;  %v1535_v17 = vpop.f32.mrb[38].mxu1 }
 0x274   :  { %v1536_v18 = vpop.f32.mrb[39].mxu1 }
 0x275   :  { %v1537_v19 = vadd.f32 %v1536_v18, %v1535_v17  ;;  %v990_v20 = vadd.f32 %v1534_v16, %v1946_v21 }
 0x277   :  { %v993_v23 = vadd.f32 %v1537_v19, %v1946_v21 }
 0x279   :  { %v1415_v24 = vpack.c.bf16 %v993_v23, %v990_v20  ;;  %v1538_v25 = vpop.f32.mrb[40].mxu1 }
 0x27a   :  { %v1539_v26 = vpop.f32.mrb[41].mxu1 }
 0x27b   :  { %1455 = vst [vmem:[#allocation8 + $0x48] sm:$0xff] %v1415_v24   ;;  %v1540_v27 = vadd.f32 %v1539_v26, %v1538_v25  ;;  %v1541_v28 = vpop.f32.mrb[42].mxu1 }
 0x27c   :  { %v1542_v29 = vpop.f32.mrb[43].mxu1 }
 0x27d   :  { %v1543_v30 = vadd.f32 %v1542_v29, %v1541_v28  ;;  %v998_v31 = vadd.f32 %v1540_v27, %v1946_v21 }
 0x27f   :  { %v1001_v32 = vadd.f32 %v1543_v30, %v1946_v21 }
 0x281   :  { %v1420_v33 = vpack.c.bf16 %v1001_v32, %v998_v31  ;;  %v1544_v34 = vpop.f32.mrb[44].mxu1 }
 0x282   :  { %v1545_v35 = vpop.f32.mrb[45].mxu1 }
 0x283   :  { %1456 = vst [vmem:[#allocation8 + $0x50] sm:$0xff] %v1420_v33   ;;  %v1546_v36 = vadd.f32 %v1545_v35, %v1544_v34  ;;  %v1547_v37 = vpop.f32.mrb[46].mxu1 }
 0x284   :  { %v1548_v38 = vpop.f32.mrb[47].mxu1 }
 0x285   :  { %v1549_v39 = vadd.f32 %v1548_v38, %v1547_v37  ;;  %v1006_v40 = vadd.f32 %v1546_v36, %v1946_v21 }
 0x287   :  { %v1009_v41 = vadd.f32 %v1549_v39, %v1946_v21 }
 0x289   :  { %v1425_v42 = vpack.c.bf16 %v1009_v41, %v1006_v40  ;;  %v1550_v43 = vpop.f32.mrb[48].mxu1 }
 0x28a   :  { %v1551_v44 = vpop.f32.mrb[49].mxu1 }
 0x28b   :  { %1457 = vst [vmem:[#allocation8 + $0x58] sm:$0xff] %v1425_v42   ;;  %v1552_v45 = vadd.f32 %v1551_v44, %v1550_v43  ;;  %v1553_v46 = vpop.f32.mrb[50].mxu1 }
 0x28c   :  { %v1554_v47 = vpop.f32.mrb[51].mxu1 }
 0x28d   :  { %v1555_v48 = vadd.f32 %v1554_v47, %v1553_v46  ;;  %v1014_v49 = vadd.f32 %v1552_v45, %v1946_v21 }
 0x28f   :  { %v1017_v50 = vadd.f32 %v1555_v48, %v1946_v21 }
 0x291   :  { %v1430_v51 = vpack.c.bf16 %v1017_v50, %v1014_v49  ;;  %v1556_v52 = vpop.f32.mrb[52].mxu1 }
 0x292   :  { %v1557_v53 = vpop.f32.mrb[53].mxu1 }
 0x293   :  { %1458 = vst [vmem:[#allocation8 + $0x60] sm:$0xff] %v1430_v51   ;;  %v1558_v54 = vadd.f32 %v1557_v53, %v1556_v52  ;;  %v1559_v55 = vpop.f32.mrb[54].mxu1 }
 0x294   :  { %v1560_v56 = vpop.f32.mrb[55].mxu1 }
 0x295   :  { %v1561_v57 = vadd.f32 %v1560_v56, %v1559_v55  ;;  %v1022_v58 = vadd.f32 %v1558_v54, %v1946_v21 }
 0x297   :  { %v1025_v59 = vadd.f32 %v1561_v57, %v1946_v21 }
 0x299   :  { %v1435_v60 = vpack.c.bf16 %v1025_v59, %v1022_v58  ;;  %v1562_v61 = vpop.f32.mrb[56].mxu1 }
 0x29a   :  { %v1563_v62 = vpop.f32.mrb[57].mxu1 }
 0x29b   :  { %1459 = vst [vmem:[#allocation8 + $0x68] sm:$0xff] %v1435_v60   ;;  %v1564_v63 = vadd.f32 %v1563_v62, %v1562_v61  ;;  %v1565_v0 = vpop.f32.mrb[58].mxu1 }
 0x29c   :  { %v1566_v1 = vpop.f32.mrb[59].mxu1 }
 0x29d   :  { %v1567_v2 = vadd.f32 %v1566_v1, %v1565_v0  ;;  %v1030_v22 = vadd.f32 %v1564_v63, %v1946_v21 }
 0x29f   :  { %v1033_v3 = vadd.f32 %v1567_v2, %v1946_v21 }
 0x2a1   :  { %v1440_v4 = vpack.c.bf16 %v1033_v3, %v1030_v22  ;;  %v1568_v5 = vpop.f32.mrb[60].mxu1 }
 0x2a2   :  { %v1569_v6 = vpop.f32.mrb[61].mxu1 }
 0x2a3   :  { %1460 = vst [vmem:[#allocation8 + $0x70] sm:$0xff] %v1440_v4   ;;  %v1570_v7 = vadd.f32 %v1569_v6, %v1568_v5  ;;  %v1571_v8 = vpop.f32.mrb[62].mxu1 }
 0x2a4   :  { %v1572_v9 = vpop.f32.mrb[63].mxu1 }
 0x2a5   :  { %v1573_v10 = vadd.f32 %v1572_v9, %v1571_v8  ;;  %v1038_v11 = vadd.f32 %v1570_v7, %v1946_v21 }
 0x2a7   :  { %v1041_v12 = vadd.f32 %v1573_v10, %v1946_v21 }
 0x2a9   :  { %v1445_v13 = vpack.c.bf16 %v1041_v12, %v1038_v11 }
 0x2ab   :  { %1461 = vst [vmem:[#allocation8 + $0x78] sm:$0xff] %v1445_v13  }
 0x2ac   :  { %1771 = shalt.err (!%p1768_p0)
}
 0x2ad   :  { %s1772_s12 = scalar_lea.hbm %s2000_s5, 2048 }
 0x2ae   :  { %p1773_p1 = scmp.ne.s32.totalorder %s2000_s5, %s1772_s12  ;;  %p1776_p2 = scmp.lt.u32.totalorder %s1772_s12, %s2000_s5 }
 0x2b0   :  { %p1778_p3 = pnand %p1776_p2, %p1773_p1 }
 0x2b2   :  { %1781 = shalt.err (!%p1778_p3)
}
 0x2b3   :  { %1215 = dma.vmem_to_hbm [thread:$0]  %s1210_s8, 2048, %s2000_s5, [#allocation4], %s1793_s0, %s1793_s0, %s1794_s21  }
 0x2b4   :  { %1786 = dma.done.wait [#allocation4], 2048  }
 0x2b5   :  { %1787 = vsyncadd [#allocation4], 4294965248 }
 0x2b6   :  { %1219 = vsyncpa [#allocation3], 1 }
 0x2b7   :  { %1220 = vsyncpa [#allocation6], 1 }
 0x2b8   :  { %1221 = vsyncpa [#allocation4], 1 }

</bundles_post_ra>
